<compile_context>
chip_gen: v7x
topology: tpu7x:2x2x1
jax: 0.10.0
libtpu: 0.0.40
codegen_flags: <defaults>
</compile_context>

<pallas_src>
import functools
import math

import jax
import jax.numpy as jnp
from jax.experimental import pallas as pl
from jax.experimental.pallas import tpu as pltpu


def _round_up(x: int, m: int) -> int:
    return ((x + m - 1) // m) * m


def _cdiv(a: int, b: int) -> int:
    return (a + b - 1) // b


def _pick_tm(n_rows: int, d: int) -> int:
    """D-aware row-tile size; ensures >=2 grid steps when there is work."""
    if d >= 1024:
        target = 256
    elif d >= 512:
        target = 512
    else:
        target = 1024
    rows8 = _round_up(max(n_rows, 1), 8)
    tm = min(target, rows8)
    if rows8 >= 16 and _cdiv(rows8, tm) < 2:
        tm = _round_up(_cdiv(rows8, 2), 8)   # split into >=2 steps (2 TCs on v7x)
    return max(8, tm)


def _highway_kernel(x_ref, w_ref, b_ref, o_ref, *, n_layers: int, d: int):
    # x_ref: (TM, D) f32 row tile
    # w_ref: (n, D, 2D)  [:, :, :D] = linear, [:, :, D:] = gate  (matmul dtype)
    # b_ref: (n, 1, 2D)  f32
    x = x_ref[...].astype(jnp.float32)                       # (TM, D)
    for i in range(n_layers):                                 # small, static
        # One fused MXU matmul per layer: (TM, D) @ (D, 2D) -> (TM, 2D).
        hg = jnp.dot(x.astype(w_ref.dtype), w_ref[i],
                     preferred_element_type=jnp.float32) + b_ref[i]
        h = jnp.maximum(hg[:, :d], 0.0)                       # relu(linear)
        g = jax.nn.sigmoid(hg[:, d:])                         # sigmoid(gate), EUP
        x = x + g * (h - x)                                   # == g*h + (1-g)*x
    o_ref[...] = x.astype(o_ref.dtype)


def pack_highway_params(w_lin, b_lin, w_gate, b_gate, *, matmul_dtype=jnp.float32):
    """Pack PyTorch-layout Linear params into the kernel's fused layout.

    Call once and cache the result (the packing is an extra HBM round-trip).
    w_lin, w_gate: (n, D, D) torch (out, in) layout.  b_lin, b_gate: (n, D).
    Returns w_packed (n, D, 2D) in matmul_dtype and b_packed (n, 1, 2D) f32.
    """
    n, d, d2 = w_lin.shape
    assert d == d2 and w_gate.shape == (n, d, d)
    assert b_lin.shape == (n, d) and b_gate.shape == (n, d)
    w = jnp.concatenate(
        [jnp.transpose(w_lin, (0, 2, 1)), jnp.transpose(w_gate, (0, 2, 1))],
        axis=-1).astype(matmul_dtype)                               # (n, D, 2D)
    b = jnp.concatenate([b_lin, b_gate], axis=-1).astype(jnp.float32)[:, None, :]
    return w, b


def highway_forward(x, w_packed, b_packed):
    """Pallas Highway forward.  x: (..., D).  Returns f32, same shape as x."""
    n_layers, D, D2 = w_packed.shape
    assert D2 == 2 * D
    assert b_packed.shape == (n_layers, 1, 2 * D)

    orig_shape = x.shape
    assert orig_shape[-1] == D
    x2 = x.reshape(-1, D)
    if x2.dtype != jnp.float32:
        x2 = x2.astype(jnp.float32)
    N = x2.shape[0]

    TM = _pick_tm(N, D)
    Np = _round_up(N, TM)
    if Np != N:
        x2 = jnp.pad(x2, ((0, Np - N), (0, 0)))
    grid = (Np // TM,)

    w_itemsize = jnp.dtype(w_packed.dtype).itemsize
    w_bytes = n_layers * D * 2 * D * w_itemsize
    b_bytes = n_layers * 2 * D * 4
    tile_bytes = TM * D * 4
    # x & out tiles double-buffered, weights/bias single-buffered, plus room
    # for the (TM, 2D) intermediate and compiler-internal scratch.
    vmem_needed = 4 * tile_bytes + w_bytes + b_bytes + 2 * TM * 2 * D * 4 + (4 << 20)
    vmem_limit = int(min(max(vmem_needed, 16 << 20), 64 << 20))

    flops = n_layers * (2 * Np * D * (2 * D) + 6 * Np * D)
    transcendentals = n_layers * Np * D
    bytes_accessed = 4 * (2 * Np * D) + w_bytes + b_bytes

    kernel = functools.partial(_highway_kernel, n_layers=n_layers, d=D)

    out = pl.pallas_call(
        kernel,
        out_shape=jax.ShapeDtypeStruct((Np, D), jnp.float32),
        grid_spec=pltpu.PrefetchScalarGridSpec(
            num_scalar_prefetch=0,
            grid=grid,
            in_specs=[
                pl.BlockSpec((TM, D), lambda i: (i, 0)),
                # Grid-invariant -> single buffer (no wasted second copy).
                pl.BlockSpec((n_layers, D, 2 * D), lambda i: (0, 0, 0),
                             pipeline_mode=pl.Buffered(1)),
                pl.BlockSpec((n_layers, 1, 2 * D), lambda i: (0, 0, 0),
                             pipeline_mode=pl.Buffered(1)),
            ],
            out_specs=pl.BlockSpec((TM, D), lambda i: (i, 0)),
        ),
        compiler_params=pltpu.CompilerParams(
            dimension_semantics=("parallel",),
            vmem_limit_bytes=vmem_limit),
        cost_estimate=pl.CostEstimate(
            flops=flops,
            transcendentals=transcendentals,
            bytes_accessed=bytes_accessed),
    )(x2, w_packed, b_packed)

    if Np != N:
        out = out[:N]
    return out.reshape(orig_shape)


if __name__ == "__main__":
    layer_num = 2
    size = 32          # hidden dim
    B, L = 2, 8        # batch, seq  -> 16 rows, grid of 2

    key = jax.random.PRNGKey(0)
    kx, *kws = jax.random.split(key, 1 + 4 * layer_num)

    x = jax.random.normal(kx, (B, L, size), dtype=jnp.float32)

    # Deterministic init matching nn.Linear's default U(-1/sqrt(in), 1/sqrt(in)).
    bound = 1.0 / math.sqrt(size)
    w_lin_l, b_lin_l, w_gate_l, b_gate_l = [], [], [], []
    idx = 0
    for _ in range(layer_num):
        w_lin_l.append(jax.random.uniform(kws[idx], (size, size), jnp.float32, -bound, bound)); idx += 1
        b_lin_l.append(jax.random.uniform(kws[idx], (size,), jnp.float32, -bound, bound)); idx += 1
        w_gate_l.append(jax.random.uniform(kws[idx], (size, size), jnp.float32, -bound, bound)); idx += 1
        b_gate_l.append(jax.random.uniform(kws[idx], (size,), jnp.float32, -bound, bound)); idx += 1
    w_lin = jnp.stack(w_lin_l)
    b_lin = jnp.stack(b_lin_l)
    w_gate = jnp.stack(w_gate_l)
    b_gate = jnp.stack(b_gate_l)

    # Pack once (hoisted out of the hot path); f32 matmul operands keep the
    # 1e-5 tolerance.  Pass matmul_dtype=jnp.bfloat16 for v6e/v7x speed if the
    # accuracy budget allows (loosen tolerance to ~1e-2 then).
    w_packed, b_packed = pack_highway_params(w_lin, b_lin, w_gate, b_gate)

    y = highway_forward(x, w_packed, b_packed)
    jax.block_until_ready(y)

    # Pure-JAX reference with identical semantics to the PyTorch module.
    ref = x
    for i in range(layer_num):
        g = jax.nn.sigmoid(ref @ w_gate[i].T + b_gate[i])
        h = jax.nn.relu(ref @ w_lin[i].T + b_lin[i])
        ref = g * h + (1.0 - g) * ref

    assert y.shape == x.shape
    assert jnp.allclose(y, ref, atol=1e-5, rtol=1e-5), "mismatch vs reference"

    print("KERNEL_OK")
</pallas_src>

<mosaic_0001>
module attributes {stable_mosaic.version = 11 : i64} {
  func.func @_highway_kernel(%arg0: i32, %arg1: memref<8x32xf32, #tpu.memory_space<vmem>>, %arg2: memref<2x32x64xf32, #tpu.memory_space<vmem>>, %arg3: memref<2x1x64xf32, #tpu.memory_space<vmem>>, %arg4: memref<8x32xf32, #tpu.memory_space<vmem>>) attributes {dimension_semantics = [#tpu.dimension_semantics<parallel>], iteration_bounds = array<i64: 2>, scalar_prefetch = 0 : i64, scratch_operands = 0 : i64, tpu.core_type = #tpu.core_type<tc>, window_params = [{transform_indices = @transform_0, window_bounds = array<i64: 8, 32>}, {pipeline_mode = #tpu.pipeline_mode<synchronous>, transform_indices = @transform_1, window_bounds = array<i64: 2, 32, 64>}, {pipeline_mode = #tpu.pipeline_mode<synchronous>, transform_indices = @transform_2, window_bounds = array<i64: 2, 1, 64>}, {transform_indices = @transform_3, window_bounds = array<i64: 8, 32>}]} {
    %c0 = arith.constant 0 : index
    %c0_0 = arith.constant 0 : index
    %0 = vector.load %arg1[%c0, %c0_0] : memref<8x32xf32, #tpu.memory_space<vmem>>, vector<8x32xf32>
    %c0_1 = arith.constant 0 : index
    %c0_2 = arith.constant 0 : index
    %c0_3 = arith.constant 0 : index
    %1 = vector.load %arg2[%c0_1, %c0_2, %c0_3] : memref<2x32x64xf32, #tpu.memory_space<vmem>>, vector<1x32x64xf32>
    %2 = vector.shape_cast %1 : vector<1x32x64xf32> to vector<32x64xf32>
    %cst = arith.constant dense<0.000000e+00> : vector<8x64xf32>
    %3 = tpu.matmul %0, %2, %cst {dimension_numbers = #tpu.dot_dimension_numbers<[1], [0], [0], [1], [0, 0, 1, 1], [], []>} : vector<8x32xf32>, vector<32x64xf32>, vector<8x64xf32> -> vector<8x64xf32>
    %c0_4 = arith.constant 0 : index
    %c0_5 = arith.constant 0 : index
    %c0_6 = arith.constant 0 : index
    %4 = vector.load %arg3[%c0_4, %c0_5, %c0_6] : memref<2x1x64xf32, #tpu.memory_space<vmem>>, vector<1x1x64xf32>
    %5 = vector.shape_cast %4 : vector<1x1x64xf32> to vector<1x64xf32>
    %6 = vector.broadcast %5 : vector<1x64xf32> to vector<8x64xf32>
    %7 = arith.addf %3, %6 : vector<8x64xf32>
    %8 = vector.extract_strided_slice %7 {offsets = [0, 0], sizes = [8, 32], strides = [1, 1]} : vector<8x64xf32> to vector<8x32xf32>
    %cst_7 = arith.constant 0.000000e+00 : f32
    %9 = vector.broadcast %cst_7 : f32 to vector<8x32xf32>
    %10 = arith.maximumf %8, %9 : vector<8x32xf32>
    %11 = vector.extract_strided_slice %7 {offsets = [0, 32], sizes = [8, 32], strides = [1, 1]} : vector<8x64xf32> to vector<8x32xf32>
    %12 = arith.negf %11 : vector<8x32xf32>
    %13 = math.exp %12 : vector<8x32xf32>
    %cst_8 = arith.constant 1.000000e+00 : f32
    %14 = vector.broadcast %cst_8 : f32 to vector<8x32xf32>
    %15 = arith.addf %14, %13 : vector<8x32xf32>
    %16 = arith.divf %14, %15 : vector<8x32xf32>
    %17 = arith.subf %10, %0 : vector<8x32xf32>
    %18 = arith.mulf %16, %17 : vector<8x32xf32>
    %19 = arith.addf %0, %18 : vector<8x32xf32>
    %c1 = arith.constant 1 : index
    %c0_9 = arith.constant 0 : index
    %c0_10 = arith.constant 0 : index
    %20 = vector.load %arg2[%c1, %c0_9, %c0_10] : memref<2x32x64xf32, #tpu.memory_space<vmem>>, vector<1x32x64xf32>
    %21 = vector.shape_cast %20 : vector<1x32x64xf32> to vector<32x64xf32>
    %cst_11 = arith.constant dense<0.000000e+00> : vector<8x64xf32>
    %22 = tpu.matmul %19, %21, %cst_11 {dimension_numbers = #tpu.dot_dimension_numbers<[1], [0], [0], [1], [0, 0, 1, 1], [], []>} : vector<8x32xf32>, vector<32x64xf32>, vector<8x64xf32> -> vector<8x64xf32>
    %c1_12 = arith.constant 1 : index
    %c0_13 = arith.constant 0 : index
    %c0_14 = arith.constant 0 : index
    %23 = vector.load %arg3[%c1_12, %c0_13, %c0_14] : memref<2x1x64xf32, #tpu.memory_space<vmem>>, vector<1x1x64xf32>
    %24 = vector.shape_cast %23 : vector<1x1x64xf32> to vector<1x64xf32>
    %25 = vector.broadcast %24 : vector<1x64xf32> to vector<8x64xf32>
    %26 = arith.addf %22, %25 : vector<8x64xf32>
    %27 = vector.extract_strided_slice %26 {offsets = [0, 0], sizes = [8, 32], strides = [1, 1]} : vector<8x64xf32> to vector<8x32xf32>
    %cst_15 = arith.constant 0.000000e+00 : f32
    %28 = vector.broadcast %cst_15 : f32 to vector<8x32xf32>
    %29 = arith.maximumf %27, %28 : vector<8x32xf32>
    %30 = vector.extract_strided_slice %26 {offsets = [0, 32], sizes = [8, 32], strides = [1, 1]} : vector<8x64xf32> to vector<8x32xf32>
    %31 = arith.negf %30 : vector<8x32xf32>
    %32 = math.exp %31 : vector<8x32xf32>
    %cst_16 = arith.constant 1.000000e+00 : f32
    %33 = vector.broadcast %cst_16 : f32 to vector<8x32xf32>
    %34 = arith.addf %33, %32 : vector<8x32xf32>
    %35 = arith.divf %33, %34 : vector<8x32xf32>
    %36 = arith.subf %29, %19 : vector<8x32xf32>
    %37 = arith.mulf %35, %36 : vector<8x32xf32>
    %38 = arith.addf %19, %37 : vector<8x32xf32>
    %c0_17 = arith.constant 0 : index
    %c0_18 = arith.constant 0 : index
    %39 = vector.load %arg4[%c0_17, %c0_18] : memref<8x32xf32, #tpu.memory_space<vmem>>, vector<8x32xf32>
    tpu.vector_store %arg4[%c0_17, %c0_18], %38 {strides = array<i32>} : memref<8x32xf32, #tpu.memory_space<vmem>>, vector<8x32xf32>,
    return
  }
  func.func @transform_0(%arg0: i32) -> (i32, i32) {
    %c0_i32 = arith.constant 0 : i32
    %c0_i32_0 = arith.constant 0 : i32
    return %arg0, %c0_i32 : i32, i32
  }
  func.func @transform_1(%arg0: i32) -> (i32, i32, i32) {
    %c0_i32 = arith.constant 0 : i32
    %c0_i32_0 = arith.constant 0 : i32
    %c0_i32_1 = arith.constant 0 : i32
    %c0_i32_2 = arith.constant 0 : i32
    return %c0_i32, %c0_i32_0, %c0_i32_1 : i32, i32, i32
  }
  func.func @transform_2(%arg0: i32) -> (i32, i32, i32) {
    %c0_i32 = arith.constant 0 : i32
    %c0_i32_0 = arith.constant 0 : i32
    %c0_i32_1 = arith.constant 0 : i32
    %c0_i32_2 = arith.constant 0 : i32
    return %c0_i32, %c0_i32_0, %c0_i32_1 : i32, i32, i32
  }
  func.func @transform_3(%arg0: i32) -> (i32, i32) {
    %c0_i32 = arith.constant 0 : i32
    %c0_i32_0 = arith.constant 0 : i32
    return %arg0, %c0_i32 : i32, i32
  }
}

</mosaic_0001>

<bundles_post_ra>
// kernel: tpu_custom_call.1
= control target key start
LH: loop header
LB: loop body
LE: loop exit
PB: predicated region body
PF: predicated region fallthrough
CT: control target
= control target key end

     0   :  { %8 = vsyncpa [#allocation3], 0  ;;  %s1010_s0 = inlined_call_operand.hbm [shape: f32[16,32], index: 0, kind: input, shape index: {}]   ;;  %s1011_s1 = inlined_call_operand.hbm [shape: f32[2,32,64], index: 1, kind: input, shape index: {}]   ;;  %s1012_s2 = inlined_call_operand.vmem [shape: f32[2,1,64], index: 2, kind: input, shape index: {}]   ;;  %s1013_s3 = inlined_call_operand.hbm [shape: f32[16,32], index: 3, kind: output, shape index: {}]  }
   0x1   :  { %10 = vsyncpa [#allocation3 + $0x1], 0 }
   0x2   :  { %11 = vsyncpa [#allocation6], 0 }
   0x3   :  { %12 = vsyncpa [#allocation4], 0 }
   0x4   :  { %14 = vsyncpa [#allocation4 + $0x1], 0  ;;  %s801_s12 = smov 0   ;;  %s803_s13 = smov 0  }
   0x5   :  { %s805_s14 = smov 0   ;;  %s807_s15 = smov 0  }
   0x6 LB: > { %s822_s16 = sadd.s32 4294967295, %s769_s15   ;;  %s504_s17 = sadd.s32 4294967294, %s769_s15   ;;  %s769_s15 = sphi %s807_s15, %s1033_s15   ;;  %s765_s14 = sphi %s805_s14, %s1032_s14   ;;  %s761_s13 = sphi %s803_s13, %s1031_s13   ;;  %s757_s12 = sphi %s801_s12, %s1030_s12  }
   0x7   : > { %p40_p0 = scmp.ne.s32.totalorder %s761_s13, %s757_s12  ;;  %p1014_p1 = scmp.eq.s32.totalorder %s822_s16, 0 }
   0x8   : > { %p112_p3 = scmp.eq.s32.totalorder %s504_s17, 1  ;;  %p505_p5 = scmp.ge.s32.totalorder %s769_s15, 1 }
   0x9   : > { %p831_p4 = por %p1014_p1, %p40_p0  ;;  %p119_p7 = scmp.lt.s32.totalorder %s769_s15, 3 }
   0xa   : > { %p836_p6 = por %p112_p3, %p40_p0  ;;  %s771_s21 = smov [#allocation5]  }
   0xb   : > { %s1017_s18 = scalar_select %p831_p4, 1, 0 }
   0xc   : > { %s1018_s19 = scalar_select %p836_p6, 1, 0 }
   0xd   : > { %p841_p8 = pnand %p505_p5, %p119_p7  ;;  %s131_s22 = sshll.u32 %s771_s21, 4  ;;  %s845_s22 = int_to_ptr.vmem [resolvable:$true] %s131_s22 }
   0xe   : > { %s857_s24 = sadd.s32 1, %s769_s15   ;;  %s27_s25 = sadd.s32 1, %s765_s14 }
   0xf   : > { %s1019_s20 = scalar_select %p841_p8, 1, 0 }
  0x10   : > { %p577_p9 = pneg %p841_p8  ;;  %s24_s26 = ssub.s32 %s769_s15, %s857_s24 }
  0x11   : > { %s641_s29 = scalar_lea.hbm %s1011_s1, 1024 }
  0x12   : > { %p852_p11 = pnand %p577_p9, %p1014_p1  ;;  %p642_p12 = scmp.ne.s32.totalorder %s1011_s1, %s641_s29 }
  0x13   : > { %p648_p5 = scmp.lt.u32.totalorder %s641_s29, %s1011_s1 }
  0x14   : > { %p643_p13 = pneg %p852_p11 }
  0x16   : > { %p644_p0 = pnand %p643_p13, %p642_p12 }
  0x18   : > { %p645_p3 = pneg %p644_p0 }
  0x1a   : > { %p650_p7 = pnand %p648_p5, %p645_p3 }
  0x1c   : > { %653 = shalt.err (!%p650_p7)
}
  0x1d   : > { %s654_s7 = scalar_lea.vmem %s845_s22, 1024  ;;  %p662_p2 = scmp.lt.s32.totalorder %s845_s22, %s845_s22 }
  0x1e   : > { %p655_p9 = scmp.ne.s32.totalorder %s845_s22, %s654_s7  ;;  %p663_p6 = scmp.lt.s32.totalorder %s654_s7, %s654_s7 }
  0x20   : > { %p657_p10 = pnand %p655_p9, %p643_p13  ;;  %p664_p4 = por %p663_p6, %p662_p2 }
  0x22   : > { %p658_p1 = pneg %p657_p10 }
  0x24   : > { %p665_p8 = pnand %p664_p4, %p658_p1 }
  0x26   : > { %668 = shalt.err (!%p665_p8)
}
  0x27   : > { %s772_s8 = smov 128   ;;  %s773_s9 = smov 8  }
  0x28   : > { %580 = dma.hbm_to_vmem [thread:$0]  (!%p852_p11), %s1011_s1, 1024, %s845_s22, [#allocation6], %s772_s8, %s772_s8, %s773_s9  }
  0x29   : > { %p25_p2 = scmp.eq.s32.totalorder %s24_s26, 0  ;;  %p34_p1 = scmp.ne.s32.totalorder %s765_s14, %s761_s13 }
  0x2a   : > { %p35_p4 = scmp.eq.s32.totalorder %s769_s15, 0  ;;  %p590_p6 = scmp.lt.s32.totalorder %s769_s15, 2 }
  0x2b   : > { %s888_s17 = scalar_select %p25_p2, %s765_s14, %s27_s25  }
  0x2c   : > { %p36_p8 = por %p35_p4, %p34_p1  ;;  %p1021_p10 = scmp.eq.s32.totalorder %s822_s16, 1 }
  0x2d   : > { %s148_s27 = sand.u32 1, %s765_s14   ;;  %s509_s28 = sshll.u32 %s769_s15, 7 }
  0x2e   : > { %p892_p12 = por %p1021_p10, %p34_p1  ;;  %s508_s29 = sshll.u32 %s148_s27, 3 }
  0x2f   : > { %s901_s4 = scalar_lea.hbm %s1010_s0, %s509_s28  ;;  %s152_s22 = scalar_lea.vmem [#allocation2], %s508_s29 }
  0x30   : > { %s159_s25 = sshll.u32 %s152_s22, 4  ;;  %p903_p11 = pnand %p590_p6, %p36_p8  ;;  %s907_s25 = int_to_ptr.vmem [resolvable:$true] %s159_s25 }
  0x31   : > { %s149_s5 = scalar_lea.sflag [#allocation3], %s148_s27  ;;  %s669_s6 = scalar_lea.hbm %s901_s4, 128 }
  0x32   : > { %p670_p13 = scmp.ne.s32.totalorder %s901_s4, %s669_s6  ;;  %p671_p0 = pneg %p903_p11 }
  0x33   : > { %s674_s9 = scalar_lea.hbm %s1010_s0, 256  ;;  %p675_p7 = scmp.lt.u32.totalorder %s901_s4, %s1010_s0 }
  0x34   : > { %p672_p3 = pnand %p671_p0, %p670_p13  ;;  %p676_p9 = scmp.lt.u32.totalorder %s674_s9, %s669_s6 }
  0x35   : > { %p678_p1 = scmp.lt.u32.totalorder %s669_s6, %s901_s4 }
  0x36   : > { %p673_p5 = pneg %p672_p3  ;;  %p677_p2 = por %p676_p9, %p675_p7 }
  0x38   : > { %p679_p4 = por %p678_p1, %p677_p2 }
  0x3a   : > { %p680_p6 = pnand %p679_p4, %p673_p5 }
  0x3c   : > { %683 = shalt.err (!%p680_p6)
}
  0x3d   : > { %s684_s27 = scalar_lea.vmem %s907_s25, 128  ;;  %s774_s28 = smov [#allocation2]  }
  0x3e   : > { %p685_p8 = scmp.ne.s32.totalorder %s907_s25, %s684_s27  ;;  %s689_s29 = sshll.u32 %s774_s28, 4  ;;  %s690_s29 = int_to_ptr.vmem [resolvable:$false] %s689_s29 }
  0x3f   : > { %s691_s23 = scalar_lea.vmem %s690_s29, 256  ;;  %p692_p3 = scmp.lt.s32.totalorder %s907_s25, %s690_s29 }
  0x40   : > { %p687_p10 = pnand %p685_p8, %p671_p0  ;;  %p693_p7 = scmp.lt.s32.totalorder %s691_s23, %s684_s27 }
  0x42   : > { %p688_p13 = pneg %p687_p10  ;;  %p694_p9 = por %p693_p7, %p692_p3 }
  0x44   : > { %p695_p2 = pnand %p694_p9, %p688_p13 }
  0x46   : > { %698 = shalt.err (!%p695_p2)
}
  0x47   : > { %584 = dma.hbm_to_vmem [thread:$0]  (!%p903_p11), %s901_s4, 128, %s907_s25, %s149_s5  }
  0x48   : > { %p1024_p5 = scmp.ne.s32.totalorder %s1019_s20, 0 }
  0x49   : > { %s937_s30 = sand.u32 (!%p1024_p5), 1, %s761_s13   ;;  %p1025_p0 = scmp.ne.s32.totalorder (!%p1024_p5), %s1017_s18, 0 }
  0x4a   : > { %168 = sbr.rel (%p1024_p5) target bundleno = 1013 (0x3f5), region = 32  ;;  %s511_s22 = sshll.u32 (!%p1024_p5), %s937_s30, 3 }
  0x4b   : > { %s171_s6 = scalar_lea.sflag (!%p1024_p5), [#allocation3], %s937_s30  ;;  %s174_s7 = scalar_lea.vmem (!%p1024_p5), [#allocation2], %s511_s22 }
  0x51   : > { %744 = dma.done.wait (%p1025_p0), %s171_s6, 128  }
  0x52   : > { %746 = vsyncadd (%p1025_p0), %s171_s6, 4294967168  ;;  %p1026_p11 = scmp.eq.s32.totalorder %s822_s16, 0 }
  0x54   : > { %748 = dma.done.wait (%p1026_p11), [#allocation6], 1024   ;;  %p1027_p1 = pmov %p1026_p11 }
  0x55   : > { %v775_v0 = vmov 0.0|0.0   ;;  %vm776_vm0 = vmmov 0   ;;  %v777_v1 = vmov 0.0   ;;  %v202_v2 = vld [vmem:[#allocation5] sm:$0xff]  ;;  %v203_v3 = vld [vmem:[#allocation5 + $0x8] sm:$0xff]  ;;  %v204_v4 = vld [vmem:[#allocation5 + $0x10] sm:$0xff] }
  0x56   : > { %750 = vsyncadd (%p1027_p1), [#allocation6], 4294966272  ;;  %557 = vmatprep.subr.bf16.mxu0 %v775_v0  ;;  %543 = vmatprep.mubr.msk.f32.mxu0 %vm776_vm0, %v777_v1  ;;  %v558_v5 = vpack.c.bf16 %v203_v3, %v202_v2  ;;  %v205_v6 = vld [vmem:[#allocation5 + $0x18] sm:$0xff]  ;;  %vm213_vm1 = vcmask 261120   ;;  %v306_v9 = vld [vmem:[#allocation5 + $0x20] sm:$0xff]  ;;  %s778_s4 = smov 32  }
  0x57   : > { %563 = vmatprep.subr.bf16.mxu1 %v775_v0  ;;  %554 = vmatprep.mubr.msk.f32.mxu1 %vm776_vm0, %v777_v1  ;;  %v561_v7 = vpack.c.bf16 %v205_v6, %v204_v4  ;;  %v201_v8 = vld [vmem:[%s174_s7] sm:$0xff]  ;;  %v307_v10 = vld [vmem:[#allocation5 + $0x28] sm:$0xff]  ;;  %s779_s25 = smov 96   ;;  %s522_s8 = sshll.u32 %s822_s16, 7 }
  0x58   : > { %559 = vmatpush3.bf16.msra.mxu0 %v558_v5  ;;  %v308_v11 = vld [vmem:[#allocation5 + $0x30] sm:$0xff]  ;;  %v564_v12 = vpack.c.bf16 %v307_v10, %v306_v9  ;;  %v309_v13 = vld [vmem:[#allocation5 + $0x38] sm:$0xff]  ;;  %s200_s9 = scalar_lea.vmem [#allocation7], %s511_s22  ;;  %s965_s28 = scalar_lea.hbm %s1013_s3, %s522_s8 }
  0x59   : > { %560 = vmatprep.subr.bf16.mxu0 %v775_v0  ;;  %v514_v14 = vld [vmem:[%s1012_s2] ss:$0 sm:$0xff]  ;;  %v567_v15 = vpack.c.bf16 %v309_v13, %v308_v11  ;;  %v518_v29 = vld [vmem:[%s1012_s2 + $0x1] ss:$0 sm:$0xff]  ;;  %s424_s10 = sshll.u32 %s200_s9, 4  ;;  %s411_s29 = scalar_lea.sflag [#allocation4], %s937_s30  ;;  %s967_s10 = int_to_ptr.vmem [resolvable:$true] %s424_s10 }
  0x5a   : > { %565 = vmatpush3.bf16.msra.mxu1 %v564_v12  ;;  %s699_s23 = scalar_lea.vmem %s967_s10, 128  ;;  %s780_s16 = smov [#allocation7]  }
  0x5b   : > { %566 = vmatprep.subr.bf16.mxu1 %v775_v0  ;;  %p700_p4 = scmp.ne.s32.totalorder %s967_s10, %s699_s23  ;;  %s703_s22 = sshll.u32 %s780_s16, 4  ;;  %s704_s22 = int_to_ptr.vmem [resolvable:$false] %s703_s22 }
  0x5c   : > { %562 = vmatpush3.bf16.msra.mxu0 %v561_v7  ;;  %s705_s6 = scalar_lea.vmem %s704_s22, 256  ;;  %p706_p10 = scmp.lt.s32.totalorder %s967_s10, %s704_s22 }
  0x5d   : > { %p701_p6 = pnand %p700_p4, %p892_p12  ;;  %p707_p13 = scmp.lt.s32.totalorder %s705_s6, %s699_s23 }
  0x5e   : > { %568 = vmatpush3.bf16.msra.mxu1 %v567_v15 }
  0x5f   : > { %544 = vmatmul.mubr.msk.f32.vlgmr.msra.gmra.mrb[0].mxu0 %vm213_vm1, %v201_v8  ;;  %p702_p8 = pneg %p701_p6  ;;  %p708_p3 = por %p707_p13, %p706_p10 }
  0x61   : > { %p709_p7 = pnand %p708_p3, %p702_p8 }
 0x132   : > { %v283_v16 = vpop.f32.mrb[0].mxu0 }
 0x133   : > { %v284_v17 = vadd.f32 %v514_v14, %v283_v16  ;;  %v545_v18 = vpop.f32.mrb[1].mxu0 }
 0x135   : > { %v287_v19 = vmax.f32 %v284_v17, 0.0  ;;  %v516_v21 = vmul.f32 -1.442695, %v284_v17 }
 0x137   : > { %v294_v20 = vsub.f32 %v287_v19, %v201_v8  ;;  %633 = vpow2.f32 %v516_v21 }
 0x139   : > { %296 = vrot.lane.b32.xlu0 %v294_v20, %s778_s4 }
 0x141   : > { %v634_v22 = vpop.eup %633 }
 0x142   : > { %v291_v23 = vadd.f32 1.0, %v634_v22 }
 0x144   : > { %635 = vrcp.f32 %v291_v23 }
 0x14e   : > { %v636_v24 = vpop.eup %635 }
 0x1ab   : > { %v297_v25 = vpop.permute.xlu0 %296 }
 0x1ac   : > { %v299_v26 = vmul.f32 %v636_v24, %v297_v25 }
 0x1ae   : > { %301 = vrot.lane.b32.xlu0 %v299_v26, %s779_s25 }
 0x220   : > { %v302_v27 = vpop.permute.xlu0 %301 }
 0x221   : > { %v304_v28 = vadd.f32 %v302_v27, %v201_v8 }
 0x223   : > { %555 = vmatmul.mubr.msk.f32.vlgmr.msra.gmra.mrb[0].mxu1 %vm213_vm1, %v304_v28 }
 0x2f6   : > { %v387_v30 = vpop.f32.mrb[0].mxu1 }
 0x2f7   : > { %v388_v31 = vadd.f32 %v518_v29, %v387_v30  ;;  %v556_v32 = vpop.f32.mrb[1].mxu1 }
 0x2f9   : > { %v391_v33 = vmax.f32 %v388_v31, 0.0  ;;  %v520_v35 = vmul.f32 -1.442695, %v388_v31 }
 0x2fb   : > { %v398_v34 = vsub.f32 %v391_v33, %v304_v28  ;;  %637 = vpow2.f32 %v520_v35 }
 0x2fd   : > { %400 = vrot.lane.b32.xlu1 %v398_v34, %s778_s4 }
 0x305   : > { %v638_v36 = vpop.eup %637 }
 0x306   : > { %v395_v37 = vadd.f32 1.0, %v638_v36 }
 0x308   : > { %639 = vrcp.f32 %v395_v37 }
 0x312   : > { %v640_v38 = vpop.eup %639 }
 0x36f   : > { %v401_v39 = vpop.permute.xlu1 %400 }
 0x370   : > { %v403_v40 = vmul.f32 %v640_v38, %v401_v39 }
 0x372   : > { %405 = vrot.lane.b32.xlu1 %v403_v40, %s779_s25 }
 0x3e4   : > { %v406_v41 = vpop.permute.xlu1 %405 }
 0x3e5   : > { %v408_v42 = vadd.f32 %v406_v41, %v304_v28 }
 0x3e7   : > { %409 = vst.msk [vmem:[%s200_s9] sm:$0xff] %vm213_vm1, %v408_v42 }
 0x3e8   : > { %712 = shalt.err (!%p709_p7)
}
 0x3e9   : > { %s713_s30 = scalar_lea.hbm %s965_s28, 128  ;;  %s717_s20 = scalar_lea.hbm %s1013_s3, 256 }
 0x3ea   : > { %p714_p9 = scmp.ne.s32.totalorder %s965_s28, %s713_s30  ;;  %p718_p0 = scmp.lt.u32.totalorder %s965_s28, %s1013_s3 }
 0x3eb   : > { %p719_p11 = scmp.lt.u32.totalorder %s717_s20, %s713_s30  ;;  %p721_p4 = scmp.lt.u32.totalorder %s713_s30, %s965_s28 }
 0x3ec   : > { %p715_p2 = pnand %p714_p9, %p892_p12 }
 0x3ed   : > { %p720_p1 = por %p719_p11, %p718_p0 }
 0x3ee   : > { %p716_p5 = pneg %p715_p2 }
 0x3ef   : > { %p722_p6 = por %p721_p4, %p720_p1 }
 0x3f1   : > { %p723_p8 = pnand %p722_p6, %p716_p5 }
 0x3f3   : > { %726 = shalt.err (!%p723_p8)
}
 0x3f4   : > { %575 = dma.vmem_to_hbm [thread:$0]  (%p892_p12), %s967_s10, 128, %s965_s28, %s411_s29  }
 0x3f5 PF: > { %s436_s26 = sand.u32 1, %s757_s12   ;;  %p1028_p10 = scmp.ne.s32.totalorder %s1018_s19, 0 }
 0x3f6   : > { %p1029_p13 = scmp.ge.s32.totalorder %s769_s15, 2  ;;  %s437_s5 = scalar_lea.sflag [#allocation4], %s436_s26 }
 0x3f8   : > { %p586_p3 = pnand %p1029_p13, %p1028_p10 }
 0x3fa   : > { %752 = dma.done.wait (!%p586_p3), %s437_s5, 128  }
 0x3fb   : > { %754 = vsyncadd (!%p586_p3), %s437_s5, 4294967168  ;;  %p17_p7 = scmp.ge.s32.totalorder %s857_s24, 4   ;;  %s1030_s12 = smov %s761_s13 }
 0x3fc   : > { %s1031_s13 = smov %s765_s14  ;;  %s1032_s14 = smov %s888_s17 }
 0x3fd   : > { %s1033_s15 = smov %s857_s24  ;;  %19 = sbr.rel (!%p17_p7) target bundleno = 6 (0x6), region = 83 }
 0x404   :  { %442 = vsyncpa [#allocation3], 1 }
 0x405   :  { %444 = vsyncpa [#allocation3 + $0x1], 1 }
 0x406   :  { %445 = vsyncpa [#allocation6], 1 }
 0x407   :  { %446 = vsyncpa [#allocation4], 1 }
 0x408   :  { %448 = vsyncpa [#allocation4 + $0x1], 1 }

</bundles_post_ra>
